<compile_context>
chip_gen: v5e
topology: v5e:2x2
jax: 0.10.0
libtpu: 0.0.40
codegen_flags: <defaults>
</compile_context>

<pallas_src>
import jax
import jax.numpy as jnp
from jax import lax
from jax.experimental import pallas as pl
from jax.experimental.pallas import tpu as pltpu

# Model dims (from the PyTorch module __init__)
VOCAB = 60
EMBED = 32
HIDDEN = 128
# TODO(synk): in the snippet `alpha = Cesar(2).alphabet` is the empty string
# (alphabet_from_file is never called); a Linear with 0 outputs is degenerate,
# so we keep the deterministic synthetic alphabet size of 30.
OUT_DIM = 30
OUT_PAD = 128          # lane-dense padded output feature dim
B_BLOCK = 8            # one sublane group per batch block
T_CHUNK_MAX = 16       # max timesteps held resident per grid step


def rnn_chunk_kernel(x_ref, w_hh_ref, w_out_ref, b_out_ref, o_ref,
                     h_ref, hs_ref):
    """One (batch block, time chunk) of the Elman RNN + fused output Linear.

    x_ref:     (T_chunk, B_block, HIDDEN)  pre-projected inputs (x@W_ih + biases)
    w_hh_ref:  (HIDDEN, HIDDEN)            W_hh^T
    w_out_ref: (HIDDEN, OUT_PAD)           W_linear^T, zero-padded to 128 lanes
    b_out_ref: (1, OUT_PAD)                linear bias, zero-padded
    o_ref:     (T_chunk, B_block, OUT_PAD) logits (lane-dense)
    h_ref:     (B_block, HIDDEN)           VMEM carry of h across time chunks
    hs_ref:    (T_chunk, B_block, HIDDEN)  VMEM chunk of hidden states
    """
    t_chunk, b_block, _ = x_ref.shape
    tc = pl.program_id(1)

    # h_0 = 0 (PyTorch default when state is None); reset at the start of each
    # batch block (time-chunk axis is the inner, sequential grid axis).
    @pl.when(tc == 0)
    def _():
        h_ref[...] = jnp.zeros_like(h_ref)

    # Hoist the loop-invariant recurrent weight; bf16 operands, f32 accumulate.
    w_hh = w_hh_ref[...].astype(jnp.bfloat16)

    def step(t, h):
        pre = x_ref[t] + jnp.dot(h.astype(jnp.bfloat16), w_hh,
                                 preferred_element_type=jnp.float32)
        h_new = jnp.tanh(pre)          # elementwise path stays f32
        hs_ref[t] = h_new
        return h_new

    # h carried in registers; short static trip count -> fully unrolled.
    h_last = lax.fori_loop(0, t_chunk, step, h_ref[...], unroll=True)
    h_ref[...] = h_last                # persist carry to the next time chunk

    # One large lane-dense output matmul for the whole chunk.
    hs = hs_ref[...].reshape(t_chunk * b_block, HIDDEN).astype(jnp.bfloat16)
    w_out = w_out_ref[...].astype(jnp.bfloat16)
    logits = (jnp.dot(hs, w_out, preferred_element_type=jnp.float32)
              + b_out_ref[...])
    o_ref[...] = logits.reshape(t_chunk, b_block, o_ref.shape[-1]).astype(o_ref.dtype)


def rnn_model_forward(sentence, params):
    """sentence: (B, T) int32 token ids. Returns (B, T, OUT_DIM) float32."""
    B, T = sentence.shape

    # --- glue (XLA): fold embedding + input projection + biases into a table.
    proj_table = (params["embed"] @ params["w_ih_t"]
                  + params["b_ih"] + params["b_hh"])            # (VOCAB, HIDDEN)
    # Per-token input term is a row gather; time-major (T, B, HIDDEN).
    x_proj = jnp.take(proj_table, sentence.T, axis=0).astype(jnp.float32)

    # Pad batch to a sublane group and time to whole chunks.
    t_chunk = min(T, T_CHUNK_MAX)
    Bp = ((B + B_BLOCK - 1) // B_BLOCK) * B_BLOCK
    Tp = ((T + t_chunk - 1) // t_chunk) * t_chunk
    x_proj = jnp.pad(x_proj, ((0, Tp - T), (0, Bp - B), (0, 0)))

    # Pad output features to a lane-dense 128 (sliced back below).
    w_out_p = jnp.pad(params["w_out_t"], ((0, 0), (0, OUT_PAD - OUT_DIM)))
    b_out_p = jnp.pad(params["b_out"], ((0, 0), (0, OUT_PAD - OUT_DIM)))

    grid = (Bp // B_BLOCK, Tp // t_chunk)

    out_tm = pl.pallas_call(
        rnn_chunk_kernel,
        out_shape=jax.ShapeDtypeStruct((Tp, Bp, OUT_PAD), jnp.float32),
        grid_spec=pltpu.PrefetchScalarGridSpec(
            num_scalar_prefetch=0,
            grid=grid,
            in_specs=[
                pl.BlockSpec((t_chunk, B_BLOCK, HIDDEN), lambda b, tc: (tc, b, 0)),
                pl.BlockSpec((HIDDEN, HIDDEN), lambda b, tc: (0, 0)),
                pl.BlockSpec((HIDDEN, OUT_PAD), lambda b, tc: (0, 0)),
                pl.BlockSpec((1, OUT_PAD), lambda b, tc: (0, 0)),
            ],
            out_specs=pl.BlockSpec((t_chunk, B_BLOCK, OUT_PAD),
                                   lambda b, tc: (tc, b, 0)),
            scratch_shapes=[
                pltpu.VMEM((B_BLOCK, HIDDEN), jnp.float32),            # h carry
                pltpu.VMEM((t_chunk, B_BLOCK, HIDDEN), jnp.float32),   # h states
            ],
        ),
        compiler_params=pltpu.CompilerParams(
            dimension_semantics=("parallel", "arbitrary"),
            vmem_limit_bytes=32 * 1024 * 1024,
        ),
    )(x_proj, params["w_hh_t"], w_out_p, b_out_p)

    # Back to batch-first and the true output width.
    return jnp.transpose(out_tm[:T, :B, :OUT_DIM], (1, 0, 2))


def init_params(key):
    ks = jax.random.split(key, 7)
    k = 1.0 / jnp.sqrt(HIDDEN)
    return {
        "embed":   jax.random.normal(ks[0], (VOCAB, EMBED), jnp.float32),
        # stored pre-transposed relative to PyTorch's (out, in) convention
        "w_ih_t":  jax.random.uniform(ks[1], (EMBED, HIDDEN), jnp.float32, -k, k),
        "w_hh_t":  jax.random.uniform(ks[2], (HIDDEN, HIDDEN), jnp.float32, -k, k),
        "b_ih":    jax.random.uniform(ks[3], (1, HIDDEN), jnp.float32, -k, k),
        "b_hh":    jax.random.uniform(ks[4], (1, HIDDEN), jnp.float32, -k, k),
        "w_out_t": jax.random.uniform(ks[5], (HIDDEN, OUT_DIM), jnp.float32, -k, k),
        "b_out":   jax.random.uniform(ks[6], (1, OUT_DIM), jnp.float32, -k, k),
    }


def reference_forward(sentence, params):
    """Pure-JAX f32 reference mirroring torch semantics."""
    embed = jnp.take(params["embed"], sentence, axis=0)  # (B, T, E)
    B, T, _ = embed.shape
    h = jnp.zeros((B, HIDDEN), jnp.float32)

    def step(h, x_t):
        h_new = jnp.tanh(x_t @ params["w_ih_t"] + params["b_ih"]
                         + h @ params["w_hh_t"] + params["b_hh"])
        return h_new, h_new

    _, hs = lax.scan(step, h, jnp.transpose(embed, (1, 0, 2)))
    o = jnp.transpose(hs, (1, 0, 2))                     # (B, T, H)
    return o @ params["w_out_t"] + params["b_out"]       # (B, T, OUT)


if __name__ == "__main__":
    key = jax.random.PRNGKey(0)
    pkey, skey = jax.random.split(key)
    params = init_params(pkey)

    B, T = 2, 8
    sentence = jax.random.randint(skey, (B, T), 0, VOCAB, dtype=jnp.int32)

    out = rnn_model_forward(sentence, params)
    out = jax.block_until_ready(out)

    ref = jax.block_until_ready(reference_forward(sentence, params))
    assert out.shape == (B, T, OUT_DIM)
    # Looser tolerance: kernel uses bf16 MXU operands with f32 accumulation.
    assert jnp.allclose(out, ref, atol=3e-2, rtol=3e-2)

    print("KERNEL_OK")
</pallas_src>

<mosaic_0001>
module attributes {stable_mosaic.version = 11 : i64} {
  func.func @rnn_chunk_kernel(%arg0: i32, %arg1: i32, %arg2: memref<8x8x128xf32, #tpu.memory_space<vmem>>, %arg3: memref<128x128xf32, #tpu.memory_space<vmem>>, %arg4: memref<128x128xf32, #tpu.memory_space<vmem>>, %arg5: memref<1x128xf32, #tpu.memory_space<vmem>>, %arg6: memref<8x8x128xf32, #tpu.memory_space<vmem>>, %arg7: memref<8x128xf32, #tpu.memory_space<vmem>>, %arg8: memref<8x8x128xf32, #tpu.memory_space<vmem>>) attributes {dimension_semantics = [#tpu.dimension_semantics<parallel>, #tpu.dimension_semantics<arbitrary>], iteration_bounds = array<i64: 1, 1>, scalar_prefetch = 0 : i64, scratch_operands = 2 : i64, tpu.core_type = #tpu.core_type<tc>, window_params = [{transform_indices = @transform_0, window_bounds = array<i64: 8, 8, 128>}, {pipeline_mode = #tpu.pipeline_mode<synchronous>, transform_indices = @transform_1, window_bounds = array<i64: 128, 128>}, {pipeline_mode = #tpu.pipeline_mode<synchronous>, transform_indices = @transform_2, window_bounds = array<i64: 128, 128>}, {pipeline_mode = #tpu.pipeline_mode<synchronous>, transform_indices = @transform_3, window_bounds = array<i64: 1, 128>}, {transform_indices = @transform_4, window_bounds = array<i64: 8, 8, 128>}]} {
    %c0_i32 = arith.constant 0 : i32
    %0 = arith.cmpi eq, %arg1, %c0_i32 : i32
    %1 = arith.extui %0 : i1 to i32
    %c0_i32_0 = arith.constant 0 : i32
    %2 = arith.cmpi ne, %1, %c0_i32_0 : i32
    scf.if %2 {
      %cst_57 = arith.constant 0.000000e+00 : f32
      %106 = vector.broadcast %cst_57 : f32 to vector<8x128xf32>
      %c0_58 = arith.constant 0 : index
      %c0_59 = arith.constant 0 : index
      %107 = vector.load %arg7[%c0_58, %c0_59] : memref<8x128xf32, #tpu.memory_space<vmem>>, vector<8x128xf32>
      tpu.vector_store %arg7[%c0_58, %c0_59], %106 {strides = array<i32>} : memref<8x128xf32, #tpu.memory_space<vmem>>, vector<8x128xf32>,
    } else {
    }
    %c0 = arith.constant 0 : index
    %c0_1 = arith.constant 0 : index
    %3 = vector.load %arg3[%c0, %c0_1] : memref<128x128xf32, #tpu.memory_space<vmem>>, vector<128x128xf32>
    %4 = arith.truncf %3 : vector<128x128xf32> to vector<128x128xbf16>
    %c0_2 = arith.constant 0 : index
    %c0_3 = arith.constant 0 : index
    %5 = vector.load %arg7[%c0_2, %c0_3] : memref<8x128xf32, #tpu.memory_space<vmem>>, vector<8x128xf32>
    %c0_i32_4 = arith.constant 0 : i32
    %6 = arith.index_cast %c0_i32_4 : i32 to index
    %c0_5 = arith.constant 0 : index
    %c0_6 = arith.constant 0 : index
    %7 = vector.load %arg2[%6, %c0_5, %c0_6] : memref<8x8x128xf32, #tpu.memory_space<vmem>>, vector<1x8x128xf32>
    %8 = vector.shape_cast %7 : vector<1x8x128xf32> to vector<8x128xf32>
    %9 = arith.truncf %5 : vector<8x128xf32> to vector<8x128xbf16>
    %cst = arith.constant dense<0.000000e+00> : vector<8x128xf32>
    %10 = tpu.matmul %9, %4, %cst {dimension_numbers = #tpu.dot_dimension_numbers<[1], [0], [0], [1], [0, 0, 1, 1], [], []>} : vector<8x128xbf16>, vector<128x128xbf16>, vector<8x128xf32> -> vector<8x128xf32>
    %11 = arith.addf %8, %10 : vector<8x128xf32>
    %12 = math.tanh %11 : vector<8x128xf32>
    %13 = arith.index_cast %c0_i32_4 : i32 to index
    %c0_7 = arith.constant 0 : index
    %c0_8 = arith.constant 0 : index
    %14 = vector.load %arg8[%13, %c0_7, %c0_8] : memref<8x8x128xf32, #tpu.memory_space<vmem>>, vector<1x8x128xf32>
    %15 = vector.shape_cast %14 : vector<1x8x128xf32> to vector<8x128xf32>
    %16 = vector.shape_cast %12 : vector<8x128xf32> to vector<1x8x128xf32>
    tpu.vector_store %arg8[%13, %c0_7, %c0_8], %16 {strides = array<i32>} : memref<8x8x128xf32, #tpu.memory_space<vmem>>, vector<1x8x128xf32>,
    %c1_i32 = arith.constant 1 : i32
    %17 = arith.index_cast %c1_i32 : i32 to index
    %c0_9 = arith.constant 0 : index
    %c0_10 = arith.constant 0 : index
    %18 = vector.load %arg2[%17, %c0_9, %c0_10] : memref<8x8x128xf32, #tpu.memory_space<vmem>>, vector<1x8x128xf32>
    %19 = vector.shape_cast %18 : vector<1x8x128xf32> to vector<8x128xf32>
    %20 = arith.truncf %12 : vector<8x128xf32> to vector<8x128xbf16>
    %cst_11 = arith.constant dense<0.000000e+00> : vector<8x128xf32>
    %21 = tpu.matmul %20, %4, %cst_11 {dimension_numbers = #tpu.dot_dimension_numbers<[1], [0], [0], [1], [0, 0, 1, 1], [], []>} : vector<8x128xbf16>, vector<128x128xbf16>, vector<8x128xf32> -> vector<8x128xf32>
    %22 = arith.addf %19, %21 : vector<8x128xf32>
    %23 = math.tanh %22 : vector<8x128xf32>
    %24 = arith.index_cast %c1_i32 : i32 to index
    %c0_12 = arith.constant 0 : index
    %c0_13 = arith.constant 0 : index
    %25 = vector.load %arg8[%24, %c0_12, %c0_13] : memref<8x8x128xf32, #tpu.memory_space<vmem>>, vector<1x8x128xf32>
    %26 = vector.shape_cast %25 : vector<1x8x128xf32> to vector<8x128xf32>
    %27 = vector.shape_cast %23 : vector<8x128xf32> to vector<1x8x128xf32>
    tpu.vector_store %arg8[%24, %c0_12, %c0_13], %27 {strides = array<i32>} : memref<8x8x128xf32, #tpu.memory_space<vmem>>, vector<1x8x128xf32>,
    %c2_i32 = arith.constant 2 : i32
    %28 = arith.index_cast %c2_i32 : i32 to index
    %c0_14 = arith.constant 0 : index
    %c0_15 = arith.constant 0 : index
    %29 = vector.load %arg2[%28, %c0_14, %c0_15] : memref<8x8x128xf32, #tpu.memory_space<vmem>>, vector<1x8x128xf32>
    %30 = vector.shape_cast %29 : vector<1x8x128xf32> to vector<8x128xf32>
    %31 = arith.truncf %23 : vector<8x128xf32> to vector<8x128xbf16>
    %cst_16 = arith.constant dense<0.000000e+00> : vector<8x128xf32>
    %32 = tpu.matmul %31, %4, %cst_16 {dimension_numbers = #tpu.dot_dimension_numbers<[1], [0], [0], [1], [0, 0, 1, 1], [], []>} : vector<8x128xbf16>, vector<128x128xbf16>, vector<8x128xf32> -> vector<8x128xf32>
    %33 = arith.addf %30, %32 : vector<8x128xf32>
    %34 = math.tanh %33 : vector<8x128xf32>
    %35 = arith.index_cast %c2_i32 : i32 to index
    %c0_17 = arith.constant 0 : index
    %c0_18 = arith.constant 0 : index
    %36 = vector.load %arg8[%35, %c0_17, %c0_18] : memref<8x8x128xf32, #tpu.memory_space<vmem>>, vector<1x8x128xf32>
    %37 = vector.shape_cast %36 : vector<1x8x128xf32> to vector<8x128xf32>
    %38 = vector.shape_cast %34 : vector<8x128xf32> to vector<1x8x128xf32>
    tpu.vector_store %arg8[%35, %c0_17, %c0_18], %38 {strides = array<i32>} : memref<8x8x128xf32, #tpu.memory_space<vmem>>, vector<1x8x128xf32>,
    %c3_i32 = arith.constant 3 : i32
    %39 = arith.index_cast %c3_i32 : i32 to index
    %c0_19 = arith.constant 0 : index
    %c0_20 = arith.constant 0 : index
    %40 = vector.load %arg2[%39, %c0_19, %c0_20] : memref<8x8x128xf32, #tpu.memory_space<vmem>>, vector<1x8x128xf32>
    %41 = vector.shape_cast %40 : vector<1x8x128xf32> to vector<8x128xf32>
    %42 = arith.truncf %34 : vector<8x128xf32> to vector<8x128xbf16>
    %cst_21 = arith.constant dense<0.000000e+00> : vector<8x128xf32>
    %43 = tpu.matmul %42, %4, %cst_21 {dimension_numbers = #tpu.dot_dimension_numbers<[1], [0], [0], [1], [0, 0, 1, 1], [], []>} : vector<8x128xbf16>, vector<128x128xbf16>, vector<8x128xf32> -> vector<8x128xf32>
    %44 = arith.addf %41, %43 : vector<8x128xf32>
    %45 = math.tanh %44 : vector<8x128xf32>
    %46 = arith.index_cast %c3_i32 : i32 to index
    %c0_22 = arith.constant 0 : index
    %c0_23 = arith.constant 0 : index
    %47 = vector.load %arg8[%46, %c0_22, %c0_23] : memref<8x8x128xf32, #tpu.memory_space<vmem>>, vector<1x8x128xf32>
    %48 = vector.shape_cast %47 : vector<1x8x128xf32> to vector<8x128xf32>
    %49 = vector.shape_cast %45 : vector<8x128xf32> to vector<1x8x128xf32>
    tpu.vector_store %arg8[%46, %c0_22, %c0_23], %49 {strides = array<i32>} : memref<8x8x128xf32, #tpu.memory_space<vmem>>, vector<1x8x128xf32>,
    %c4_i32 = arith.constant 4 : i32
    %50 = arith.index_cast %c4_i32 : i32 to index
    %c0_24 = arith.constant 0 : index
    %c0_25 = arith.constant 0 : index
    %51 = vector.load %arg2[%50, %c0_24, %c0_25] : memref<8x8x128xf32, #tpu.memory_space<vmem>>, vector<1x8x128xf32>
    %52 = vector.shape_cast %51 : vector<1x8x128xf32> to vector<8x128xf32>
    %53 = arith.truncf %45 : vector<8x128xf32> to vector<8x128xbf16>
    %cst_26 = arith.constant dense<0.000000e+00> : vector<8x128xf32>
    %54 = tpu.matmul %53, %4, %cst_26 {dimension_numbers = #tpu.dot_dimension_numbers<[1], [0], [0], [1], [0, 0, 1, 1], [], []>} : vector<8x128xbf16>, vector<128x128xbf16>, vector<8x128xf32> -> vector<8x128xf32>
    %55 = arith.addf %52, %54 : vector<8x128xf32>
    %56 = math.tanh %55 : vector<8x128xf32>
    %57 = arith.index_cast %c4_i32 : i32 to index
    %c0_27 = arith.constant 0 : index
    %c0_28 = arith.constant 0 : index
    %58 = vector.load %arg8[%57, %c0_27, %c0_28] : memref<8x8x128xf32, #tpu.memory_space<vmem>>, vector<1x8x128xf32>
    %59 = vector.shape_cast %58 : vector<1x8x128xf32> to vector<8x128xf32>
    %60 = vector.shape_cast %56 : vector<8x128xf32> to vector<1x8x128xf32>
    tpu.vector_store %arg8[%57, %c0_27, %c0_28], %60 {strides = array<i32>} : memref<8x8x128xf32, #tpu.memory_space<vmem>>, vector<1x8x128xf32>,
    %c5_i32 = arith.constant 5 : i32
    %61 = arith.index_cast %c5_i32 : i32 to index
    %c0_29 = arith.constant 0 : index
    %c0_30 = arith.constant 0 : index
    %62 = vector.load %arg2[%61, %c0_29, %c0_30] : memref<8x8x128xf32, #tpu.memory_space<vmem>>, vector<1x8x128xf32>
    %63 = vector.shape_cast %62 : vector<1x8x128xf32> to vector<8x128xf32>
    %64 = arith.truncf %56 : vector<8x128xf32> to vector<8x128xbf16>
    %cst_31 = arith.constant dense<0.000000e+00> : vector<8x128xf32>
    %65 = tpu.matmul %64, %4, %cst_31 {dimension_numbers = #tpu.dot_dimension_numbers<[1], [0], [0], [1], [0, 0, 1, 1], [], []>} : vector<8x128xbf16>, vector<128x128xbf16>, vector<8x128xf32> -> vector<8x128xf32>
    %66 = arith.addf %63, %65 : vector<8x128xf32>
    %67 = math.tanh %66 : vector<8x128xf32>
    %68 = arith.index_cast %c5_i32 : i32 to index
    %c0_32 = arith.constant 0 : index
    %c0_33 = arith.constant 0 : index
    %69 = vector.load %arg8[%68, %c0_32, %c0_33] : memref<8x8x128xf32, #tpu.memory_space<vmem>>, vector<1x8x128xf32>
    %70 = vector.shape_cast %69 : vector<1x8x128xf32> to vector<8x128xf32>
    %71 = vector.shape_cast %67 : vector<8x128xf32> to vector<1x8x128xf32>
    tpu.vector_store %arg8[%68, %c0_32, %c0_33], %71 {strides = array<i32>} : memref<8x8x128xf32, #tpu.memory_space<vmem>>, vector<1x8x128xf32>,
    %c6_i32 = arith.constant 6 : i32
    %72 = arith.index_cast %c6_i32 : i32 to index
    %c0_34 = arith.constant 0 : index
    %c0_35 = arith.constant 0 : index
    %73 = vector.load %arg2[%72, %c0_34, %c0_35] : memref<8x8x128xf32, #tpu.memory_space<vmem>>, vector<1x8x128xf32>
    %74 = vector.shape_cast %73 : vector<1x8x128xf32> to vector<8x128xf32>
    %75 = arith.truncf %67 : vector<8x128xf32> to vector<8x128xbf16>
    %cst_36 = arith.constant dense<0.000000e+00> : vector<8x128xf32>
    %76 = tpu.matmul %75, %4, %cst_36 {dimension_numbers = #tpu.dot_dimension_numbers<[1], [0], [0], [1], [0, 0, 1, 1], [], []>} : vector<8x128xbf16>, vector<128x128xbf16>, vector<8x128xf32> -> vector<8x128xf32>
    %77 = arith.addf %74, %76 : vector<8x128xf32>
    %78 = math.tanh %77 : vector<8x128xf32>
    %79 = arith.index_cast %c6_i32 : i32 to index
    %c0_37 = arith.constant 0 : index
    %c0_38 = arith.constant 0 : index
    %80 = vector.load %arg8[%79, %c0_37, %c0_38] : memref<8x8x128xf32, #tpu.memory_space<vmem>>, vector<1x8x128xf32>
    %81 = vector.shape_cast %80 : vector<1x8x128xf32> to vector<8x128xf32>
    %82 = vector.shape_cast %78 : vector<8x128xf32> to vector<1x8x128xf32>
    tpu.vector_store %arg8[%79, %c0_37, %c0_38], %82 {strides = array<i32>} : memref<8x8x128xf32, #tpu.memory_space<vmem>>, vector<1x8x128xf32>,
    %c7_i32 = arith.constant 7 : i32
    %83 = arith.index_cast %c7_i32 : i32 to index
    %c0_39 = arith.constant 0 : index
    %c0_40 = arith.constant 0 : index
    %84 = vector.load %arg2[%83, %c0_39, %c0_40] : memref<8x8x128xf32, #tpu.memory_space<vmem>>, vector<1x8x128xf32>
    %85 = vector.shape_cast %84 : vector<1x8x128xf32> to vector<8x128xf32>
    %86 = arith.truncf %78 : vector<8x128xf32> to vector<8x128xbf16>
    %cst_41 = arith.constant dense<0.000000e+00> : vector<8x128xf32>
    %87 = tpu.matmul %86, %4, %cst_41 {dimension_numbers = #tpu.dot_dimension_numbers<[1], [0], [0], [1], [0, 0, 1, 1], [], []>} : vector<8x128xbf16>, vector<128x128xbf16>, vector<8x128xf32> -> vector<8x128xf32>
    %88 = arith.addf %85, %87 : vector<8x128xf32>
    %89 = math.tanh %88 : vector<8x128xf32>
    %90 = arith.index_cast %c7_i32 : i32 to index
    %c0_42 = arith.constant 0 : index
    %c0_43 = arith.constant 0 : index
    %91 = vector.load %arg8[%90, %c0_42, %c0_43] : memref<8x8x128xf32, #tpu.memory_space<vmem>>, vector<1x8x128xf32>
    %92 = vector.shape_cast %91 : vector<1x8x128xf32> to vector<8x128xf32>
    %93 = vector.shape_cast %89 : vector<8x128xf32> to vector<1x8x128xf32>
    tpu.vector_store %arg8[%90, %c0_42, %c0_43], %93 {strides = array<i32>} : memref<8x8x128xf32, #tpu.memory_space<vmem>>, vector<1x8x128xf32>,
    %c8_i32 = arith.constant 8 : i32
    %c0_44 = arith.constant 0 : index
    %c0_45 = arith.constant 0 : index
    %94 = vector.load %arg7[%c0_44, %c0_45] : memref<8x128xf32, #tpu.memory_space<vmem>>, vector<8x128xf32>
    tpu.vector_store %arg7[%c0_44, %c0_45], %89 {strides = array<i32>} : memref<8x128xf32, #tpu.memory_space<vmem>>, vector<8x128xf32>,
    %c0_46 = arith.constant 0 : index
    %c0_47 = arith.constant 0 : index
    %c0_48 = arith.constant 0 : index
    %95 = vector.load %arg8[%c0_46, %c0_47, %c0_48] : memref<8x8x128xf32, #tpu.memory_space<vmem>>, vector<8x8x128xf32>
    %96 = vector.shape_cast %95 : vector<8x8x128xf32> to vector<64x128xf32>
    %97 = arith.truncf %96 : vector<64x128xf32> to vector<64x128xbf16>
    %c0_49 = arith.constant 0 : index
    %c0_50 = arith.constant 0 : index
    %98 = vector.load %arg4[%c0_49, %c0_50] : memref<128x128xf32, #tpu.memory_space<vmem>>, vector<128x128xf32>
    %99 = arith.truncf %98 : vector<128x128xf32> to vector<128x128xbf16>
    %cst_51 = arith.constant dense<0.000000e+00> : vector<64x128xf32>
    %100 = tpu.matmul %97, %99, %cst_51 {dimension_numbers = #tpu.dot_dimension_numbers<[1], [0], [0], [1], [0, 0, 1, 1], [], []>} : vector<64x128xbf16>, vector<128x128xbf16>, vector<64x128xf32> -> vector<64x128xf32>
    %c0_52 = arith.constant 0 : index
    %c0_53 = arith.constant 0 : index
    %101 = vector.load %arg5[%c0_52, %c0_53] : memref<1x128xf32, #tpu.memory_space<vmem>>, vector<1x128xf32>
    %102 = vector.broadcast %101 : vector<1x128xf32> to vector<64x128xf32>
    %103 = arith.addf %100, %102 : vector<64x128xf32>
    %104 = vector.shape_cast %103 : vector<64x128xf32> to vector<8x8x128xf32>
    %c0_54 = arith.constant 0 : index
    %c0_55 = arith.constant 0 : index
    %c0_56 = arith.constant 0 : index
    %105 = vector.load %arg6[%c0_54, %c0_55, %c0_56] : memref<8x8x128xf32, #tpu.memory_space<vmem>>, vector<8x8x128xf32>
    tpu.vector_store %arg6[%c0_54, %c0_55, %c0_56], %104 {strides = array<i32>} : memref<8x8x128xf32, #tpu.memory_space<vmem>>, vector<8x8x128xf32>,
    return
  }
  func.func @transform_0(%arg0: i32, %arg1: i32) -> (i32, i32, i32) {
    %c0_i32 = arith.constant 0 : i32
    %c0_i32_0 = arith.constant 0 : i32
    return %arg1, %arg0, %c0_i32 : i32, i32, i32
  }
  func.func @transform_1(%arg0: i32, %arg1: i32) -> (i32, i32) {
    %c0_i32 = arith.constant 0 : i32
    %c0_i32_0 = arith.constant 0 : i32
    %c0_i32_1 = arith.constant 0 : i32
    return %c0_i32, %c0_i32_0 : i32, i32
  }
  func.func @transform_2(%arg0: i32, %arg1: i32) -> (i32, i32) {
    %c0_i32 = arith.constant 0 : i32
    %c0_i32_0 = arith.constant 0 : i32
    %c0_i32_1 = arith.constant 0 : i32
    return %c0_i32, %c0_i32_0 : i32, i32
  }
  func.func @transform_3(%arg0: i32, %arg1: i32) -> (i32, i32) {
    %c0_i32 = arith.constant 0 : i32
    %c0_i32_0 = arith.constant 0 : i32
    %c0_i32_1 = arith.constant 0 : i32
    return %c0_i32, %c0_i32_0 : i32, i32
  }
  func.func @transform_4(%arg0: i32, %arg1: i32) -> (i32, i32, i32) {
    %c0_i32 = arith.constant 0 : i32
    %c0_i32_0 = arith.constant 0 : i32
    return %arg1, %arg0, %c0_i32 : i32, i32, i32
  }
}

</mosaic_0001>

<bundles_post_ra>
// kernel: tpu_custom_call.1
= control target key start
LH: loop header
LB: loop body
LE: loop exit
PB: predicated region body
PF: predicated region fallthrough
CT: control target
= control target key end

     0   :  { %9 = vsyncpa [#allocation5], 0  ;;  %s626_s0 = inlined_call_operand.hbm [shape: f32[8,8,128], index: 0, kind: input, shape index: {}]   ;;  %s627_s1 = inlined_call_operand.hbm [shape: f32[128,128], index: 1, kind: input, shape index: {}]   ;;  %s628_s2 = inlined_call_operand.hbm [shape: f32[128,128], index: 2, kind: input, shape index: {}]   ;;  %s629_s3 = inlined_call_operand.vmem [shape: f32[1,128], index: 3, kind: input, shape index: {}]   ;;  %s630_s4 = inlined_call_operand.hbm [shape: f32[8,8,128], index: 4, kind: output, shape index: {}]  }
   0x1   :  { %10 = vsyncpa [#allocation8], 0 }
   0x2   :  { %11 = vsyncpa [#allocation6], 0  ;;  %s29_s17 = sshll.u32 %s627_s1, 4  ;;  %s477_s18 = smov [#allocation7]   ;;  %s30_s17 = int_to_ptr.hbm [resolvable:$true] %s29_s17 }
   0x3   :  { %s31_s19 = sshll.u32 %s477_s18, 4  ;;  %s16_s22 = sshll.u32 %s626_s0, 4  ;;  %s32_s19 = int_to_ptr.vmem [resolvable:$true] %s31_s19  ;;  %s17_s22 = int_to_ptr.hbm [resolvable:$true] %s16_s22 }
   0x4   :  { %s478_s23 = smov 128   ;;  %s479_s24 = smov 8  }
   0x5   :  { %37 = dma.hbm_to_vmem [thread:$0]  %s30_s17, 2048, %s32_s19, [#allocation8], %s478_s23, %s478_s23, %s479_s24  }
   0x6   :  { %s480_s25 = smov [#allocation4]   ;;  %s42_s1 = sshll.u32 %s628_s2, 4  ;;  %s43_s1 = int_to_ptr.hbm [resolvable:$true] %s42_s1 }
   0x7   :  { %s18_s26 = sshll.u32 %s480_s25, 4  ;;  %s481_s0 = smov [#allocation9]   ;;  %s19_s26 = int_to_ptr.vmem [resolvable:$true] %s18_s26 }
   0x8   :  { %24 = dma.hbm_to_vmem [thread:$0]  %s17_s22, 1024, %s19_s26, [#allocation5], %s478_s23, %s478_s23, %s479_s24  }
   0x9   :  { %s44_s29 = sshll.u32 %s481_s0, 4  ;;  %s45_s29 = int_to_ptr.vmem [resolvable:$true] %s44_s29 }
   0xa   :  { %50 = dma.hbm_to_vmem [thread:$0]  %s43_s1, 2048, %s45_s29, [#allocation8], %s478_s23, %s478_s23, %s479_s24  }
   0xb   :  { %471 = dma.done.wait [#allocation5], 1024  }
   0xc   :  { %472 = vsyncadd [#allocation5], 4294966272 }
   0xd   :  { %473 = dma.done.wait [#allocation8], 4096  }
   0xe   :  { %474 = vsyncadd [#allocation8], 4294963200  ;;  %v84_v0 = vld [vmem:[#allocation7 + $0x70] sm:$0xff]  ;;  %v85_v1 = vld [vmem:[#allocation7 + $0x78] sm:$0xff]  ;;  %v482_v24 = vmov 0.0|0.0   ;;  %s337_s8 = sshll.u32 %s630_s4, 4  ;;  %s338_s8 = int_to_ptr.hbm [resolvable:$true] %s337_s8 }
   0xf   :  { %v82_v2 = vld [vmem:[#allocation7 + $0x60] sm:$0xff]  ;;  %v527_v3 = vpack.c.bf16 %v85_v1, %v84_v0  ;;  %v83_v4 = vld [vmem:[#allocation7 + $0x68] sm:$0xff]  ;;  %v80_v6 = vld [vmem:[#allocation7 + $0x50] sm:$0xff] }
  0x10   :  { %v530_v5 = vpack.c.bf16 %v83_v4, %v82_v2  ;;  %v81_v7 = vld [vmem:[#allocation7 + $0x58] sm:$0xff]  ;;  %v78_v9 = vld [vmem:[#allocation7 + $0x40] sm:$0xff]  ;;  %v79_v10 = vld [vmem:[#allocation7 + $0x48] sm:$0xff] }
  0x11   :  { %97 = vmatpush.bf16.msra.mxu1 %v527_v3  ;;  %136 = vmatpush.bf16.msra.mxu2 %v527_v3  ;;  %v535_v8 = vpack.c.bf16 %v81_v7, %v80_v6  ;;  %v540_v11 = vpack.c.bf16 %v79_v10, %v78_v9  ;;  %v76_v12 = vld [vmem:[#allocation7 + $0x30] sm:$0xff]  ;;  %v77_v13 = vld [vmem:[#allocation7 + $0x38] sm:$0xff]  ;;  %v74_v15 = vld [vmem:[#allocation7 + $0x20] sm:$0xff] }
  0x12   :  { %156 = vmatpush.bf16.msra.mxu3 %v527_v3  ;;  %v545_v14 = vpack.c.bf16 %v77_v13, %v76_v12  ;;  %v75_v16 = vld [vmem:[#allocation7 + $0x28] sm:$0xff]  ;;  %v72_v18 = vld [vmem:[#allocation7 + $0x10] sm:$0xff]  ;;  %v73_v19 = vld [vmem:[#allocation7 + $0x18] sm:$0xff] }
  0x13   :  { %v550_v17 = vpack.c.bf16 %v75_v16, %v74_v15  ;;  %v555_v20 = vpack.c.bf16 %v73_v19, %v72_v18  ;;  %v70_v21 = vld [vmem:[#allocation7] sm:$0xff]  ;;  %v71_v22 = vld [vmem:[#allocation7 + $0x8] sm:$0xff]  ;;  %v280_v25 = vld [vmem:[#allocation9 + $0x70] sm:$0xff] }
  0x14   :  { %v560_v23 = vpack.c.bf16 %v71_v22, %v70_v21  ;;  %v281_v26 = vld [vmem:[#allocation9 + $0x78] sm:$0xff]  ;;  %v278_v27 = vld [vmem:[#allocation9 + $0x60] sm:$0xff]  ;;  %v279_v29 = vld [vmem:[#allocation9 + $0x68] sm:$0xff] }
  0x15   :  { %98 = vmatpush.bf16.msra.mxu1 %v530_v5  ;;  %137 = vmatpush.bf16.msra.mxu2 %v530_v5  ;;  %v289_v28 = vpack.c.bf16 %v281_v26, %v280_v25  ;;  %v288_v30 = vpack.c.bf16 %v279_v29, %v278_v27  ;;  %v276_v31 = vld [vmem:[#allocation9 + $0x50] sm:$0xff]  ;;  %v277_v32 = vld [vmem:[#allocation9 + $0x58] sm:$0xff]  ;;  %v274_v34 = vld [vmem:[#allocation9 + $0x40] sm:$0xff] }
  0x16   :  { %157 = vmatpush.bf16.msra.mxu3 %v530_v5  ;;  %v287_v33 = vpack.c.bf16 %v277_v32, %v276_v31  ;;  %v275_v35 = vld [vmem:[#allocation9 + $0x48] sm:$0xff]  ;;  %v272_v37 = vld [vmem:[#allocation9 + $0x30] sm:$0xff]  ;;  %v273_v38 = vld [vmem:[#allocation9 + $0x38] sm:$0xff] }
  0x17   :  { %294 = vmatpush.bf16.msra.mxu0 %v289_v28  ;;  %v286_v36 = vpack.c.bf16 %v275_v35, %v274_v34  ;;  %v285_v39 = vpack.c.bf16 %v273_v38, %v272_v37  ;;  %v95_v40 = vld [vmem:[#allocation4] sm:$0xff]  ;;  %v271_v47 = vld [vmem:[#allocation9 + $0x28] sm:$0xff]  ;;  %v268_v49 = vld [vmem:[#allocation9 + $0x10] sm:$0xff] }
  0x18   :  { %v270_v46 = vld [vmem:[#allocation9 + $0x20] sm:$0xff]  ;;  %v269_v50 = vld [vmem:[#allocation9 + $0x18] sm:$0xff]  ;;  %v267_v53 = vld [vmem:[#allocation9 + $0x8] sm:$0xff] }
  0x19   :  { %99 = vmatpush.bf16.msra.mxu1 %v535_v8  ;;  %138 = vmatpush.bf16.msra.mxu2 %v535_v8  ;;  %v284_v48 = vpack.c.bf16 %v271_v47, %v270_v46  ;;  %v283_v51 = vpack.c.bf16 %v269_v50, %v268_v49  ;;  %v266_v52 = vld [vmem:[#allocation9] sm:$0xff]  ;;  %v114_v55 = vld [vmem:[#allocation4 + $0x8] sm:$0xff]  ;;  %v134_v1 = vld [vmem:[#allocation4 + $0x10] sm:$0xff] }
  0x1a   :  { %158 = vmatpush.bf16.msra.mxu3 %v535_v8  ;;  %v282_v54 = vpack.c.bf16 %v267_v53, %v266_v52  ;;  %v610_v62 = vld [vmem:[%s629_s3] ss:$0 sm:$0xff]  ;;  %v154_v9 = vld [vmem:[#allocation4 + $0x18] sm:$0xff]  ;;  %v194_v26 = vld [vmem:[#allocation4 + $0x28] sm:$0xff]  ;;  %s483_s3 = smov [#allocation10]  }
  0x1b   :  { %295 = vmatpush.bf16.msra.mxu0 %v288_v30  ;;  %v174_v18 = vld [vmem:[#allocation4 + $0x20] sm:$0xff]  ;;  %v214_v35 = vld [vmem:[#allocation4 + $0x30] sm:$0xff]  ;;  %s335_s5 = sshll.u32 %s483_s3, 4  ;;  %s336_s5 = int_to_ptr.vmem [resolvable:$true] %s335_s5 }
  0x1d   :  { %100 = vmatpush.bf16.msra.mxu1 %v540_v11  ;;  %139 = vmatpush.bf16.msra.mxu2 %v540_v11 }
  0x1e   :  { %159 = vmatpush.bf16.msra.mxu3 %v540_v11 }
  0x1f   :  { %296 = vmatpush.bf16.msra.mxu0 %v287_v33 }
  0x21   :  { %101 = vmatpush.bf16.msra.mxu1 %v545_v14  ;;  %140 = vmatpush.bf16.msra.mxu2 %v545_v14 }
  0x22   :  { %160 = vmatpush.bf16.msra.mxu3 %v545_v14 }
  0x23   :  { %297 = vmatpush.bf16.msra.mxu0 %v286_v36 }
  0x25   :  { %102 = vmatpush.bf16.msra.mxu1 %v550_v17  ;;  %141 = vmatpush.bf16.msra.mxu2 %v550_v17 }
  0x26   :  { %161 = vmatpush.bf16.msra.mxu3 %v550_v17 }
  0x27   :  { %298 = vmatpush.bf16.msra.mxu0 %v285_v39 }
  0x29   :  { %103 = vmatpush.bf16.msra.mxu1 %v555_v20  ;;  %142 = vmatpush.bf16.msra.mxu2 %v555_v20 }
  0x2a   :  { %162 = vmatpush.bf16.msra.mxu3 %v555_v20 }
  0x2b   :  { %299 = vmatpush.bf16.msra.mxu0 %v284_v48 }
  0x2d   :  { %104 = vmatpush.bf16.msra.mxu1 %v560_v23  ;;  %143 = vmatpush.bf16.msra.mxu2 %v560_v23 }
  0x2e   :  { %163 = vmatpush.bf16.msra.mxu3 %v560_v23 }
  0x2f   :  { %300 = vmatpush.bf16.msra.mxu0 %v283_v51 }
  0x30   :  { %105 = vmatmul.bf16.vlgmr.msra.gmra.mxu1 %v482_v24 }
  0x31   :  { %116 = vmatpush.bf16.msrb.mxu1 %v527_v3  ;;  %176 = vmatpush.bf16.msrb.mxu2 %v527_v3 }
  0x32   :  { %236 = vmatpush.bf16.msrb.mxu3 %v527_v3 }
  0x33   :  { %301 = vmatpush.bf16.msra.mxu0 %v282_v54 }
  0x35   :  { %117 = vmatpush.bf16.msrb.mxu1 %v530_v5  ;;  %177 = vmatpush.bf16.msrb.mxu2 %v530_v5 }
  0x36   :  { %237 = vmatpush.bf16.msrb.mxu3 %v530_v5 }
  0x39   :  { %118 = vmatpush.bf16.msrb.mxu1 %v535_v8  ;;  %178 = vmatpush.bf16.msrb.mxu2 %v535_v8 }
  0x3a   :  { %238 = vmatpush.bf16.msrb.mxu3 %v535_v8 }
  0x3d   :  { %119 = vmatpush.bf16.msrb.mxu1 %v540_v11  ;;  %179 = vmatpush.bf16.msrb.mxu2 %v540_v11 }
  0x3e   :  { %239 = vmatpush.bf16.msrb.mxu3 %v540_v11 }
  0x41   :  { %120 = vmatpush.bf16.msrb.mxu1 %v545_v14  ;;  %180 = vmatpush.bf16.msrb.mxu2 %v545_v14 }
  0x42   :  { %240 = vmatpush.bf16.msrb.mxu3 %v545_v14 }
  0x45   :  { %121 = vmatpush.bf16.msrb.mxu1 %v550_v17  ;;  %181 = vmatpush.bf16.msrb.mxu2 %v550_v17 }
  0x46   :  { %241 = vmatpush.bf16.msrb.mxu3 %v550_v17 }
  0x49   :  { %122 = vmatpush.bf16.msrb.mxu1 %v555_v20  ;;  %182 = vmatpush.bf16.msrb.mxu2 %v555_v20 }
  0x4a   :  { %242 = vmatpush.bf16.msrb.mxu3 %v555_v20 }
  0x4d   :  { %123 = vmatpush.bf16.msrb.mxu1 %v560_v23  ;;  %183 = vmatpush.bf16.msrb.mxu2 %v560_v23 }
  0x4e   :  { %243 = vmatpush.bf16.msrb.mxu3 %v560_v23 }
  0x51   :  { %196 = vmatpush.bf16.msra.mxu1 %v527_v3 }
  0x55   :  { %197 = vmatpush.bf16.msra.mxu1 %v530_v5 }
  0x59   :  { %198 = vmatpush.bf16.msra.mxu1 %v535_v8 }
  0x5d   :  { %199 = vmatpush.bf16.msra.mxu1 %v540_v11 }
  0x61   :  { %200 = vmatpush.bf16.msra.mxu1 %v545_v14 }
  0x65   :  { %201 = vmatpush.bf16.msra.mxu1 %v550_v17 }
  0x69   :  { %202 = vmatpush.bf16.msra.mxu1 %v555_v20 }
  0x6d   :  { %203 = vmatpush.bf16.msra.mxu1 %v560_v23 }
  0xad   :  { %v106_v41 = vpop.f32.mrf.mxu1 }
  0xae   :  { %v110_v42 = vadd.f32 %v106_v41, %v95_v40 }
  0xb0   :  { %359 = vtanh.f32 %v110_v42 }
  0xb5   :  { %v108_v43 = vpop.f32.mrf.mxu1 }
  0xb6   :  { %v360_v44 = vpop.eup %359  ;;  %v234_v43 = vld [vmem:[#allocation4 + $0x38] sm:$0xff] }
  0xb7   :  { %v115_v45 = vpack.c.bf16 %v360_v44, %v360_v44 }
  0xb9   :  { %124 = vmatmul.bf16.vlgmr.msrb.gmra.mxu1 %v115_v45 }
 0x136   :  { %v125_v56 = vpop.f32.mrf.mxu1 }
 0x137   :  { %v129_v57 = vadd.f32 %v125_v56, %v114_v55 }
 0x139   :  { %361 = vtanh.f32 %v129_v57 }
 0x13e   :  { %v127_v58 = vpop.f32.mrf.mxu1 }
 0x13f   :  { %v362_v59 = vpop.eup %361 }
 0x140   :  { %v135_v60 = vpack.c.bf16 %v362_v59, %v362_v59  ;;  %v262_v61 = vpack.c.bf16 %v362_v59, %v360_v44 }
 0x142   :  { %144 = vmatmul.bf16.vlgmr.msra.gmra.mxu2 %v135_v60  ;;  %302 = vmatmul.bf16.vlgmr.msra.gmra.mxu0 %v262_v61 }
 0x143   :  { %216 = vmatpush.bf16.msra.mxu2 %v527_v3 }
 0x147   :  { %217 = vmatpush.bf16.msra.mxu2 %v530_v5 }
 0x14b   :  { %218 = vmatpush.bf16.msra.mxu2 %v535_v8 }
 0x14f   :  { %219 = vmatpush.bf16.msra.mxu2 %v540_v11 }
 0x153   :  { %220 = vmatpush.bf16.msra.mxu2 %v545_v14 }
 0x157   :  { %221 = vmatpush.bf16.msra.mxu2 %v550_v17 }
 0x15b   :  { %222 = vmatpush.bf16.msra.mxu2 %v555_v20 }
 0x15f   :  { %223 = vmatpush.bf16.msra.mxu2 %v560_v23 }
 0x1bf   :  { %v303_v63 = vpop.f32.mrf.mxu0 }
 0x1c0   :  { %v304_v0 = vadd.f32 %v610_v62, %v303_v63 }
 0x1c2   :  { %323 = vst [vmem:[#allocation10] sm:$0xff] %v304_v0 }
 0x1c5   :  { %v145_v2 = vpop.f32.mrf.mxu2 }
 0x1c6   :  { %v149_v3 = vadd.f32 %v145_v2, %v134_v1 }
 0x1c7   :  { %v305_v4 = vpop.f32.mrf.mxu0 }
 0x1c8   :  { %363 = vtanh.f32 %v149_v3  ;;  %v306_v5 = vadd.f32 %v610_v62, %v305_v4 }
 0x1ca   :  { %324 = vst [vmem:[#allocation10 + $0x8] sm:$0xff] %v306_v5 }
 0x1cd   :  { %v147_v6 = vpop.f32.mrf.mxu2 }
 0x1ce   :  { %v364_v7 = vpop.eup %363 }
 0x1cf   :  { %v155_v8 = vpack.c.bf16 %v364_v7, %v364_v7 }
 0x1d1   :  { %164 = vmatmul.bf16.vlgmr.msra.gmra.mxu3 %v155_v8 }
 0x254   :  { %v165_v10 = vpop.f32.mrf.mxu3 }
 0x255   :  { %v169_v11 = vadd.f32 %v165_v10, %v154_v9 }
 0x257   :  { %365 = vtanh.f32 %v169_v11 }
 0x25c   :  { %v167_v12 = vpop.f32.mrf.mxu3 }
 0x25d   :  { %v366_v13 = vpop.eup %365 }
 0x25e   :  { %v175_v14 = vpack.c.bf16 %v366_v13, %v366_v13  ;;  %v263_v15 = vpack.c.bf16 %v366_v13, %v364_v7 }
 0x260   :  { %184 = vmatmul.bf16.vlgmr.msrb.gmra.mxu2 %v175_v14  ;;  %307 = vmatmul.bf16.gmra.mxu0 %v263_v15 }
 0x2dd   :  { %v308_v16 = vpop.f32.mrf.mxu0 }
 0x2de   :  { %v309_v17 = vadd.f32 %v610_v62, %v308_v16 }
 0x2e0   :  { %325 = vst [vmem:[#allocation10 + $0x10] sm:$0xff] %v309_v17 }
 0x2e3   :  { %v185_v19 = vpop.f32.mrf.mxu2 }
 0x2e4   :  { %v189_v20 = vadd.f32 %v185_v19, %v174_v18 }
 0x2e5   :  { %v310_v21 = vpop.f32.mrf.mxu0 }
 0x2e6   :  { %367 = vtanh.f32 %v189_v20  ;;  %v311_v22 = vadd.f32 %v610_v62, %v310_v21 }
 0x2e8   :  { %326 = vst [vmem:[#allocation10 + $0x18] sm:$0xff] %v311_v22 }
 0x2eb   :  { %v187_v23 = vpop.f32.mrf.mxu2 }
 0x2ec   :  { %v368_v24 = vpop.eup %367 }
 0x2ed   :  { %v195_v25 = vpack.c.bf16 %v368_v24, %v368_v24 }
 0x2ef   :  { %204 = vmatmul.bf16.vlgmr.msra.gmra.mxu1 %v195_v25 }
 0x36c   :  { %v205_v27 = vpop.f32.mrf.mxu1 }
 0x36d   :  { %v209_v28 = vadd.f32 %v205_v27, %v194_v26 }
 0x36f   :  { %369 = vtanh.f32 %v209_v28 }
 0x374   :  { %v207_v29 = vpop.f32.mrf.mxu1 }
 0x375   :  { %v370_v30 = vpop.eup %369 }
 0x376   :  { %v215_v31 = vpack.c.bf16 %v370_v30, %v370_v30  ;;  %v264_v32 = vpack.c.bf16 %v370_v30, %v368_v24 }
 0x378   :  { %224 = vmatmul.bf16.vlgmr.msra.gmra.mxu2 %v215_v31  ;;  %312 = vmatmul.bf16.gmra.mxu0 %v264_v32 }
 0x3f5   :  { %v313_v33 = vpop.f32.mrf.mxu0 }
 0x3f6   :  { %v314_v34 = vadd.f32 %v610_v62, %v313_v33 }
 0x3f8   :  { %327 = vst [vmem:[#allocation10 + $0x20] sm:$0xff] %v314_v34 }
 0x3fb   :  { %v225_v36 = vpop.f32.mrf.mxu2 }
 0x3fc   :  { %v229_v37 = vadd.f32 %v225_v36, %v214_v35 }
 0x3fd   :  { %v315_v38 = vpop.f32.mrf.mxu0 }
 0x3fe   :  { %371 = vtanh.f32 %v229_v37  ;;  %v316_v39 = vadd.f32 %v610_v62, %v315_v38 }
 0x400   :  { %328 = vst [vmem:[#allocation10 + $0x28] sm:$0xff] %v316_v39 }
 0x403   :  { %v227_v40 = vpop.f32.mrf.mxu2 }
 0x404   :  { %v372_v41 = vpop.eup %371 }
 0x405   :  { %v235_v42 = vpack.c.bf16 %v372_v41, %v372_v41 }
 0x407   :  { %244 = vmatmul.bf16.vlgmr.msrb.gmra.mxu3 %v235_v42 }
 0x48a   :  { %v245_v44 = vpop.f32.mrf.mxu3 }
 0x48b   :  { %v249_v45 = vadd.f32 %v245_v44, %v234_v43 }
 0x48d   :  { %373 = vtanh.f32 %v249_v45 }
 0x492   :  { %v247_v46 = vpop.f32.mrf.mxu3 }
 0x493   :  { %v374_v47 = vpop.eup %373 }
 0x494   :  { %v265_v48 = vpack.c.bf16 %v374_v47, %v372_v41 }
 0x496   :  { %317 = vmatmul.bf16.gmra.mxu0 %v265_v48 }
 0x513   :  { %v318_v49 = vpop.f32.mrf.mxu0 }
 0x514   :  { %v319_v50 = vadd.f32 %v610_v62, %v318_v49 }
 0x516   :  { %329 = vst [vmem:[#allocation10 + $0x30] sm:$0xff] %v319_v50 }
 0x51b   :  { %v320_v51 = vpop.f32.mrf.mxu0 }
 0x51c   :  { %v321_v52 = vadd.f32 %v610_v62, %v320_v51 }
 0x51e   :  { %330 = vst [vmem:[#allocation10 + $0x38] sm:$0xff] %v321_v52 }
 0x51f   :  { %343 = dma.vmem_to_hbm [thread:$0]  %s336_s5, 1024, %s338_s8, [#allocation6], %s478_s23, %s478_s23, %s479_s24  }
 0x520   :  { %475 = dma.done.wait [#allocation6], 1024  }
 0x521   :  { %476 = vsyncadd [#allocation6], 4294966272 }
 0x522   :  { %348 = vsyncpa [#allocation5], 1 }
 0x523   :  { %349 = vsyncpa [#allocation8], 1 }
 0x524   :  { %350 = vsyncpa [#allocation6], 1 }

</bundles_post_ra>
